<compile_context>
chip_gen: v7x
topology: tpu7x:2x2x1
jax: 0.10.0
libtpu: 0.0.40
codegen_flags: <defaults>
</compile_context>

<pallas_src>
import functools

import jax
import jax.numpy as jnp
from jax.experimental import pallas as pl
from jax.experimental.pallas import tpu as pltpu


def _cdiv(a, b):
    return -(-a // b)


def _vmem_budget_bytes():
    """~75% of per-core VMEM (48 MiB on v7x, 96 MiB on v5e/v6e)."""
    cap = 64 * 1024 * 1024  # conservative default = v7x per-TC physical VMEM
    try:
        info = pltpu.get_tpu_info()
        cap = int(getattr(info, "vmem_capacity_bytes", cap)) or cap
    except Exception:
        pass
    return (cap * 3) // 4


def _tensorcores_per_chip():
    """2 on v7x (megacore), 1 on v5e/v6e.  Heuristic on device_kind."""
    try:
        kind = jax.devices()[0].device_kind.lower()
    except Exception:
        return 1
    return 2 if ("v7" in kind or "tpu7" in kind) else 1


# ---------------------------------------------------------------------------
# Kernels
# ---------------------------------------------------------------------------

def _se_fused_kernel(x_ref, w1t_ref, b1_ref, alpha_ref, w2t_ref, b2_ref, o_ref,
                     *, inv_s):
    # x_ref block: (bn, C, S) f32, full spatial extent in one block.
    pooled = jnp.sum(x_ref[...], axis=-1) * inv_s                      # (bn, C)
    h = jnp.dot(pooled, w1t_ref[...],
                preferred_element_type=jnp.float32) + b1_ref[...]      # (bn, Ch)
    alpha = alpha_ref[0]                                               # SMEM scalar
    h = jnp.where(h >= 0, h, alpha * h)                                # PReLU
    g = jnp.dot(h, w2t_ref[...],
                preferred_element_type=jnp.float32) + b2_ref[...]      # (bn, C)
    g = jax.nn.sigmoid(g)
    # Re-read x_ref so the block streams through vregs twice instead of being
    # held live across the gate math (avoids spills for large blocks).
    o_ref[...] = (x_ref[...] * g[:, :, None]).astype(o_ref.dtype)


def _se_pool_gate_kernel(x_ref, w1t_ref, b1_ref, alpha_ref, w2t_ref, b2_ref,
                         g_ref, acc_ref, *, inv_s, s_true, s_tile, mask_tail):
    # Pass 1 of the tiled path: accumulate pooled sums over spatial tiles,
    # compute the sigmoid gate on the last tile.
    s = pl.program_id(1)

    @pl.when(s == 0)
    def _():
        acc_ref[...] = jnp.zeros_like(acc_ref)

    x = x_ref[...]                                                     # (bn, C, ts)
    if mask_tail:
        # Partial last tile: OOB block padding is undefined, mask it to zero.
        col = jax.lax.broadcasted_iota(jnp.int32, x.shape, 2) + s * s_tile
        x = jnp.where(col < s_true, x, 0.0)
    acc_ref[...] += jnp.sum(x, axis=-1)                                # (bn, C)

    @pl.when(s == pl.num_programs(1) - 1)
    def _():
        pooled = acc_ref[...] * inv_s
        h = jnp.dot(pooled, w1t_ref[...],
                    preferred_element_type=jnp.float32) + b1_ref[...]
        alpha = alpha_ref[0]
        h = jnp.where(h >= 0, h, alpha * h)
        g = jnp.dot(h, w2t_ref[...],
                    preferred_element_type=jnp.float32) + b2_ref[...]
        g_ref[...] = jax.nn.sigmoid(g)[:, None, :]                     # (bn, 1, C)


def _se_scale_kernel(g_ref, x_ref, o_ref):
    # Pass 2 of the tiled path: out = x * gate, streamed tile by tile.
    g = g_ref[...][:, 0, :, None]                                      # (bn, C, 1)
    o_ref[...] = (x_ref[...] * g).astype(o_ref.dtype)


# ---------------------------------------------------------------------------
# Wrapper
# ---------------------------------------------------------------------------

def se_block(x_ncdhw, w1, b1, alpha, w2, b2, *, force_tiled=False,
             spatial_tile=None):
    """x_ncdhw: (N, C, D, H, W) float32, PyTorch NCDHW convention."""
    N, C, D, H, W = x_ncdhw.shape
    S = D * H * W
    Ch = w1.shape[0]

    x = x_ncdhw.reshape(N, C, S)

    # Conv3d 1x1x1 weights (C_out, C_in) -> transposed for row-batched matmuls.
    w1t = jnp.asarray(w1, jnp.float32).T                 # (C, Ch)
    w2t = jnp.asarray(w2, jnp.float32).T                 # (Ch, C)
    b1_2d = jnp.asarray(b1, jnp.float32).reshape(1, Ch)
    b2_2d = jnp.asarray(b2, jnp.float32).reshape(1, C)
    alpha_1d = jnp.asarray(alpha, jnp.float32).reshape(1)
    w_args = (w1t, b1_2d, alpha_1d, w2t, b2_2d)

    vmem_budget = _vmem_budget_bytes()
    vmem_limit = int(vmem_budget)
    weights_bytes = 2 * (2 * C * Ch + C + Ch) * 4        # double-buffered consts
    headroom = 2 * 1024 * 1024                           # Mosaic internal scratch
    usable = vmem_budget - weights_bytes - headroom
    target_block_bytes = 8 * 1024 * 1024
    bytes_per_sample = C * S * 4

    # Largest per-step batch such that double-buffered in + out blocks fit VMEM.
    fit_bn = usable // (4 * bytes_per_sample)

    if fit_bn >= 1 and not force_tiled:
        # -------------- single-pass path: (bn, C, S) blocks -----------------
        bn_target = max(1, target_block_bytes // bytes_per_sample)
        bn = min(N, max(1, min(int(fit_bn), bn_target)))
        if _tensorcores_per_chip() >= 2 and N >= 2:
            bn = min(bn, _cdiv(N, 2))                    # >= 2 steps for megacore
            for cand in range(bn, 0, -1):                # prefer an even step count
                if _cdiv(N, cand) % 2 == 0:
                    bn = cand
                    break
        grid = (_cdiv(N, bn),)

        out = pl.pallas_call(
            functools.partial(_se_fused_kernel, inv_s=1.0 / S),
            out_shape=jax.ShapeDtypeStruct((N, C, S), x.dtype),
            grid=grid,
            in_specs=[
                pl.BlockSpec((bn, C, S), lambda n: (n, 0, 0)),        # x
                pl.BlockSpec((C, Ch), lambda n: (0, 0)),              # w1^T
                pl.BlockSpec((1, Ch), lambda n: (0, 0)),              # b1
                pl.BlockSpec(memory_space=pltpu.MemorySpace.SMEM),    # alpha
                pl.BlockSpec((Ch, C), lambda n: (0, 0)),              # w2^T
                pl.BlockSpec((1, C), lambda n: (0, 0)),               # b2
            ],
            out_specs=pl.BlockSpec((bn, C, S), lambda n: (n, 0, 0)),
            compiler_params=pltpu.CompilerParams(
                dimension_semantics=("parallel",),
                vmem_limit_bytes=vmem_limit,
            ),
        )(x, *w_args)
        return out.reshape(N, C, D, H, W)

    # ------------ tiled two-pass path: grid over (N, spatial tiles) ---------
    bn = 1
    if spatial_tile is not None:
        ts = int(spatial_tile)
    else:
        ts_target = max(1, target_block_bytes // (C * 4))
        ts_fit = max(1, usable // (4 * C * 4))
        ts = min(ts_target, ts_fit)
    ts = max(128, (ts // 128) * 128)                     # lane-aligned tile
    if ts >= S:
        ts = S                                           # full extent (== array dim)
    mask_tail = (S % ts) != 0
    nb, sb = _cdiv(N, bn), _cdiv(S, ts)

    gate = pl.pallas_call(
        functools.partial(_se_pool_gate_kernel, inv_s=1.0 / S, s_true=S,
                          s_tile=ts, mask_tail=mask_tail),
        out_shape=jax.ShapeDtypeStruct((N, 1, C), jnp.float32),
        grid=(nb, sb),
        in_specs=[
            pl.BlockSpec((bn, C, ts), lambda n, s: (n, 0, s)),        # x
            pl.BlockSpec((C, Ch), lambda n, s: (0, 0)),               # w1^T
            pl.BlockSpec((1, Ch), lambda n, s: (0, 0)),               # b1
            pl.BlockSpec(memory_space=pltpu.MemorySpace.SMEM),        # alpha
            pl.BlockSpec((Ch, C), lambda n, s: (0, 0)),               # w2^T
            pl.BlockSpec((1, C), lambda n, s: (0, 0)),                # b2
        ],
        out_specs=pl.BlockSpec((bn, 1, C), lambda n, s: (n, 0, 0)),
        scratch_shapes=[pltpu.VMEM((bn, C), jnp.float32)],
        compiler_params=pltpu.CompilerParams(
            dimension_semantics=("parallel", "arbitrary"),
            vmem_limit_bytes=vmem_limit,
        ),
    )(x, *w_args)

    out = pl.pallas_call(
        _se_scale_kernel,
        out_shape=jax.ShapeDtypeStruct((N, C, S), x.dtype),
        grid=(nb, sb),
        in_specs=[
            pl.BlockSpec((bn, 1, C), lambda n, s: (n, 0, 0)),         # gate
            pl.BlockSpec((bn, C, ts), lambda n, s: (n, 0, s)),        # x
        ],
        out_specs=pl.BlockSpec((bn, C, ts), lambda n, s: (n, 0, s)),
        compiler_params=pltpu.CompilerParams(
            dimension_semantics=("parallel", "parallel"),
            vmem_limit_bytes=vmem_limit,
        ),
    )(gate, x)
    return out.reshape(N, C, D, H, W)


def se_block_ref(x, w1, b1, alpha, w2, b2):
    """Pure-JAX reference matching the PyTorch module semantics."""
    pooled = jnp.mean(x, axis=(2, 3, 4), keepdims=True)               # (N,C,1,1,1)
    h = jnp.einsum('oc,ncdhw->nodhw', w1, pooled) + b1.reshape(1, -1, 1, 1, 1)
    h = jnp.where(h >= 0, h, alpha * h)                               # PReLU
    g = jnp.einsum('oc,ncdhw->nodhw', w2, h) + b2.reshape(1, -1, 1, 1, 1)
    g = jax.nn.sigmoid(g)
    return x * g


if __name__ == "__main__":
    def run_case(N, C, D, H, W, r, seed, **kwargs):
        Ch = max(1, C // r)
        key = jax.random.PRNGKey(seed)
        k_x, k_w1, k_b1, k_w2, k_b2 = jax.random.split(key, 5)

        x = jax.random.normal(k_x, (N, C, D, H, W), dtype=jnp.float32)
        # Conv3d 1x1x1 weights, PyTorch (C_out, C_in, 1,1,1) -> (C_out, C_in)
        w1 = 0.1 * jax.random.normal(k_w1, (Ch, C), dtype=jnp.float32)
        b1 = 0.1 * jax.random.normal(k_b1, (Ch,), dtype=jnp.float32)
        w2 = 0.1 * jax.random.normal(k_w2, (C, Ch), dtype=jnp.float32)
        b2 = 0.1 * jax.random.normal(k_b2, (C,), dtype=jnp.float32)
        alpha = jnp.float32(0.25)  # nn.PReLU() default single-parameter init

        out = jax.block_until_ready(se_block(x, w1, b1, alpha, w2, b2, **kwargs))
        ref = se_block_ref(x, w1, b1, alpha, w2, b2)
        assert out.shape == x.shape and out.dtype == x.dtype
        err = float(jnp.max(jnp.abs(out - ref)))
        assert jnp.allclose(out, ref, atol=1e-5, rtol=1e-5), err

    # SE_block(F_in=32, r=16): single-pass path, S = 8^3 = 512 (lane-dense).
    run_case(2, 32, 8, 8, 8, 16, 0)
    # Single-pass path with non-multiple-of-128 spatial size (S = 343) and a
    # ragged batch (N=3) -- no host-side pad/slice, masked tail store only.
    run_case(3, 32, 7, 7, 7, 16, 1)
    # Tiled two-pass fallback (used when one sample exceeds VMEM), exercised at
    # a small shape: spatial tile 128 over S=343 -> 3 tiles incl. a masked tail.
    run_case(2, 32, 7, 7, 7, 16, 2, force_tiled=True, spatial_tile=128)

    print("KERNEL_OK")
</pallas_src>

<mosaic_0001>
module attributes {stable_mosaic.version = 11 : i64} {
  func.func @_se_fused_kernel(%arg0: i32, %arg1: memref<2x32x512xf32, #tpu.memory_space<vmem>>, %arg2: memref<32x2xf32, #tpu.memory_space<vmem>>, %arg3: memref<1x2xf32, #tpu.memory_space<vmem>>, %arg4: memref<1xf32, #tpu.memory_space<smem>>, %arg5: memref<2x32xf32, #tpu.memory_space<vmem>>, %arg6: memref<1x32xf32, #tpu.memory_space<vmem>>, %arg7: memref<2x32x512xf32, #tpu.memory_space<vmem>>) attributes {dimension_semantics = [#tpu.dimension_semantics<parallel>], iteration_bounds = array<i64: 1>, scalar_prefetch = 0 : i64, scratch_operands = 0 : i64, tpu.core_type = #tpu.core_type<tc>, window_params = [{transform_indices = @transform_0, window_bounds = array<i64: 2, 32, 512>}, {pipeline_mode = #tpu.pipeline_mode<synchronous>, transform_indices = @transform_1, window_bounds = array<i64: 32, 2>}, {pipeline_mode = #tpu.pipeline_mode<synchronous>, transform_indices = @transform_2, window_bounds = array<i64: 1, 2>}, {transform_indices = @transform_3, window_bounds = array<i64: 1>}, {pipeline_mode = #tpu.pipeline_mode<synchronous>, transform_indices = @transform_4, window_bounds = array<i64: 2, 32>}, {pipeline_mode = #tpu.pipeline_mode<synchronous>, transform_indices = @transform_5, window_bounds = array<i64: 1, 32>}, {transform_indices = @transform_6, window_bounds = array<i64: 2, 32, 512>}]} {
    %c0 = arith.constant 0 : index
    %c0_0 = arith.constant 0 : index
    %c0_1 = arith.constant 0 : index
    %0 = vector.load %arg1[%c0, %c0_0, %c0_1] : memref<2x32x512xf32, #tpu.memory_space<vmem>>, vector<2x32x512xf32>
    %cst = arith.constant dense<0.000000e+00> : vector<2x32xf32>
    %1 = vector.multi_reduction <add>, %0, %cst [2] : vector<2x32x512xf32> to vector<2x32xf32>
    %cst_2 = arith.constant 0.001953125 : f32
    %2 = vector.broadcast %cst_2 : f32 to vector<2x32xf32>
    %3 = arith.mulf %1, %2 : vector<2x32xf32>
    %c0_3 = arith.constant 0 : index
    %c0_4 = arith.constant 0 : index
    %4 = vector.load %arg2[%c0_3, %c0_4] : memref<32x2xf32, #tpu.memory_space<vmem>>, vector<32x2xf32>
    %cst_5 = arith.constant dense<0.000000e+00> : vector<2x2xf32>
    %5 = tpu.matmul %3, %4, %cst_5 {dimension_numbers = #tpu.dot_dimension_numbers<[1], [0], [0], [1], [0, 0, 1, 1], [], []>} : vector<2x32xf32>, vector<32x2xf32>, vector<2x2xf32> -> vector<2x2xf32>
    %c0_6 = arith.constant 0 : index
    %c0_7 = arith.constant 0 : index
    %6 = vector.load %arg3[%c0_6, %c0_7] : memref<1x2xf32, #tpu.memory_space<vmem>>, vector<1x2xf32>
    %7 = vector.broadcast %6 : vector<1x2xf32> to vector<2x2xf32>
    %8 = arith.addf %5, %7 : vector<2x2xf32>
    %c0_8 = arith.constant 0 : index
    %9 = memref.load %arg4[%c0_8] : memref<1xf32, #tpu.memory_space<smem>>
    %cst_9 = arith.constant 0.000000e+00 : f32
    %10 = vector.broadcast %cst_9 : f32 to vector<2x2xf32>
    %11 = arith.cmpf oge, %8, %10 : vector<2x2xf32>
    %12 = vector.broadcast %9 : f32 to vector<2x2xf32>
    %13 = arith.mulf %12, %8 : vector<2x2xf32>
    %14 = arith.select %11, %8, %13 : vector<2x2xi1>, vector<2x2xf32>
    %c0_10 = arith.constant 0 : index
    %c0_11 = arith.constant 0 : index
    %15 = vector.load %arg5[%c0_10, %c0_11] : memref<2x32xf32, #tpu.memory_space<vmem>>, vector<2x32xf32>
    %cst_12 = arith.constant dense<0.000000e+00> : vector<2x32xf32>
    %16 = tpu.matmul %14, %15, %cst_12 {dimension_numbers = #tpu.dot_dimension_numbers<[1], [0], [0], [1], [0, 0, 1, 1], [], []>} : vector<2x2xf32>, vector<2x32xf32>, vector<2x32xf32> -> vector<2x32xf32>
    %c0_13 = arith.constant 0 : index
    %c0_14 = arith.constant 0 : index
    %17 = vector.load %arg6[%c0_13, %c0_14] : memref<1x32xf32, #tpu.memory_space<vmem>>, vector<1x32xf32>
    %18 = vector.broadcast %17 : vector<1x32xf32> to vector<2x32xf32>
    %19 = arith.addf %16, %18 : vector<2x32xf32>
    %20 = arith.negf %19 : vector<2x32xf32>
    %21 = math.exp %20 : vector<2x32xf32>
    %cst_15 = arith.constant 1.000000e+00 : f32
    %22 = vector.broadcast %cst_15 : f32 to vector<2x32xf32>
    %23 = arith.addf %22, %21 : vector<2x32xf32>
    %24 = arith.divf %22, %23 : vector<2x32xf32>
    %c0_16 = arith.constant 0 : index
    %c0_17 = arith.constant 0 : index
    %c0_18 = arith.constant 0 : index
    %25 = vector.load %arg1[%c0_16, %c0_17, %c0_18] : memref<2x32x512xf32, #tpu.memory_space<vmem>>, vector<2x32x512xf32>
    %26 = vector.shape_cast %24 : vector<2x32xf32> to vector<2x32x1xf32>
    %27 = vector.broadcast %26 : vector<2x32x1xf32> to vector<2x32x512xf32>
    %28 = arith.mulf %25, %27 : vector<2x32x512xf32>
    %c0_19 = arith.constant 0 : index
    %c0_20 = arith.constant 0 : index
    %c0_21 = arith.constant 0 : index
    %29 = vector.load %arg7[%c0_19, %c0_20, %c0_21] : memref<2x32x512xf32, #tpu.memory_space<vmem>>, vector<2x32x512xf32>
    tpu.vector_store %arg7[%c0_19, %c0_20, %c0_21], %28 {strides = array<i32>} : memref<2x32x512xf32, #tpu.memory_space<vmem>>, vector<2x32x512xf32>,
    return
  }
  func.func @transform_0(%arg0: i32) -> (i32, i32, i32) {
    %c0_i32 = arith.constant 0 : i32
    %c0_i32_0 = arith.constant 0 : i32
    %c0_i32_1 = arith.constant 0 : i32
    return %arg0, %c0_i32, %c0_i32_0 : i32, i32, i32
  }
  func.func @transform_1(%arg0: i32) -> (i32, i32) {
    %c0_i32 = arith.constant 0 : i32
    %c0_i32_0 = arith.constant 0 : i32
    %c0_i32_1 = arith.constant 0 : i32
    return %c0_i32, %c0_i32_0 : i32, i32
  }
  func.func @transform_2(%arg0: i32) -> (i32, i32) {
    %c0_i32 = arith.constant 0 : i32
    %c0_i32_0 = arith.constant 0 : i32
    %c0_i32_1 = arith.constant 0 : i32
    return %c0_i32, %c0_i32_0 : i32, i32
  }
  func.func @transform_3(%arg0: i32) -> i32 {
    %c0_i32 = arith.constant 0 : i32
    %c0_i32_0 = arith.constant 0 : i32
    return %c0_i32 : i32
  }
  func.func @transform_4(%arg0: i32) -> (i32, i32) {
    %c0_i32 = arith.constant 0 : i32
    %c0_i32_0 = arith.constant 0 : i32
    %c0_i32_1 = arith.constant 0 : i32
    return %c0_i32, %c0_i32_0 : i32, i32
  }
  func.func @transform_5(%arg0: i32) -> (i32, i32) {
    %c0_i32 = arith.constant 0 : i32
    %c0_i32_0 = arith.constant 0 : i32
    %c0_i32_1 = arith.constant 0 : i32
    return %c0_i32, %c0_i32_0 : i32, i32
  }
  func.func @transform_6(%arg0: i32) -> (i32, i32, i32) {
    %c0_i32 = arith.constant 0 : i32
    %c0_i32_0 = arith.constant 0 : i32
    %c0_i32_1 = arith.constant 0 : i32
    return %arg0, %c0_i32, %c0_i32_0 : i32, i32, i32
  }
}

</mosaic_0001>

<bundles_post_ra>
// kernel: tpu_custom_call.1
= control target key start
LH: loop header
LB: loop body
LE: loop exit
PB: predicated region body
PF: predicated region fallthrough
CT: control target
= control target key end

     0   :  { %12 = vsyncpa [#allocation4], 0  ;;  %s801_s0 = inlined_call_operand.hbm [shape: f32[2,32,512], index: 0, kind: input, shape index: {}]   ;;  %s802_s1 = inlined_call_operand.vmem [shape: f32[32,2], index: 1, kind: input, shape index: {}]   ;;  %s803_s2 = inlined_call_operand.vmem [shape: f32[1,2], index: 2, kind: input, shape index: {}]   ;;  %s804_s3 = inlined_call_operand.<no memory space> [shape: f32[1], index: 3, kind: input, shape index: {}]   ;;  %s805_s4 = inlined_call_operand.vmem [shape: f32[2,32], index: 4, kind: input, shape index: {}]   ;;  %s806_s5 = inlined_call_operand.vmem [shape: f32[1,32], index: 5, kind: input, shape index: {}]   ;;  %s807_s6 = inlined_call_operand.hbm [shape: f32[2,32,512], index: 6, kind: output, shape index: {}]  }
   0x1   :  { %13 = vsyncpa [#allocation5], 0  ;;  %s569_s21 = smov [#allocation3]   ;;  %s521_s25 = scalar_lea.hbm %s801_s0, 4096 }
   0x2   :  { %s19_s22 = sshll.u32 %s569_s21, 4  ;;  %p522_p0 = scmp.ne.s32.totalorder %s801_s0, %s521_s25  ;;  %s20_s22 = int_to_ptr.vmem [resolvable:$true] %s19_s22 }
   0x3   :  { %p525_p1 = scmp.lt.u32.totalorder %s521_s25, %s801_s0 }
   0x5   :  { %p527_p2 = pnand %p525_p1, %p522_p0 }
   0x7   :  { %530 = shalt.err (!%p527_p2)
}
   0x8   :  { %s531_s30 = scalar_lea.vmem %s20_s22, 4096  ;;  %p536_p4 = scmp.lt.s32.totalorder %s20_s22, %s20_s22 }
   0x9   :  { %p532_p3 = scmp.ne.s32.totalorder %s20_s22, %s531_s30  ;;  %p537_p5 = scmp.lt.s32.totalorder %s531_s30, %s531_s30 }
   0xb   :  { %p538_p6 = por %p537_p5, %p536_p4 }
   0xd   :  { %p539_p7 = pnand %p538_p6, %p532_p3 }
   0xf   :  { %542 = shalt.err (!%p539_p7)
}
  0x10   :  { %s570_s7 = smov 512   ;;  %s571_s8 = smov 32  }
  0x11   :  { %25 = dma.hbm_to_vmem [thread:$0]  %s801_s0, 4096, %s20_s22, [#allocation4], %s570_s7, %s570_s7, %s571_s8  }
  0x12   :  { %565 = dma.done.wait [#allocation4], 4096  }
  0x13   :  { %566 = vsyncadd [#allocation4], 4294963200  ;;  %v626_v0 = vld [vmem:[#allocation3 + $0x80] sm:$0xff]  ;;  %v628_v1 = vld [vmem:[#allocation3 + $0x88] sm:$0xff]  ;;  %v572_v59 = vmov 0.0|0.0   ;;  %vm573_vm0 = vmmov 0  }
  0x14   :  { %v630_v2 = vld [vmem:[#allocation3 + $0x90] sm:$0xff]  ;;  %v91_v3 = vadd.f32 %v628_v1, %v626_v0  ;;  %v634_v4 = vld [vmem:[#allocation3] sm:$0xff]  ;;  %v636_v5 = vld [vmem:[#allocation3 + $0x8] sm:$0xff]  ;;  %504 = vmatprep.subr.bf16.mxu0 %v572_v59  ;;  %v574_v63 = vmov 0.0   ;;  %vm149_vm1 = vcmask 130112   ;;  %vm156_vm2 = vcmask 195712  }
  0x15   :  { %v638_v6 = vld [vmem:[#allocation3 + $0x98] sm:$0xff]  ;;  %v640_v7 = vld [vmem:[#allocation3 + $0x10] sm:$0xff]  ;;  %v71_v8 = vadd.f32 %v636_v5, %v634_v4  ;;  %v644_v9 = vld [vmem:[#allocation3 + $0xa0] sm:$0xff]  ;;  %496 = vmatprep.mubr.msk.f32.mxu0 %vm573_vm0, %v574_v63  ;;  %499 = vmatprep.subr.mxu1 %v574_v63  ;;  %vm163_vm3 = vcmask 261312   ;;  %vm184_vm4 = vcmask 1041409   ;;  %vm186_vm5 = vcmask 261120  }
  0x16   :  { %v92_v10 = vadd.f32 %v91_v3, %v630_v2  ;;  %v647_v11 = vld [vmem:[#allocation3 + $0x18] sm:$0xff]  ;;  %v649_v12 = vld [vmem:[#allocation3 + $0xa8] sm:$0xff]  ;;  %v651_v13 = vld [vmem:[#allocation3 + $0xb0] sm:$0xff]  ;;  %501 = vmatprep.mubr.msk.f32.mxu1 %vm573_vm0, %v574_v63  ;;  %v138_v3 = vlaneseq  ;;  %vm276_vm6 = vcmask 1041408   ;;  %vm272_vm8 = vcmask 15360  }
  0x17   :  { %v72_v14 = vadd.f32 %v71_v8, %v640_v7  ;;  %v96_v15 = vadd.f32 %v649_v12, %v644_v9  ;;  %v656_v16 = vld [vmem:[#allocation3 + $0x20] sm:$0xff]  ;;  %v658_v17 = vld [vmem:[#allocation3 + $0x28] sm:$0xff]  ;;  %v660_v18 = vld [vmem:[#allocation3 + $0x30] sm:$0xff] }
  0x18   :  { %v93_v19 = vadd.f32 %v92_v10, %v638_v6  ;;  %v663_v20 = vld [vmem:[#allocation3 + $0xb8] sm:$0xff]  ;;  %v76_v21 = vadd.f32 %v658_v17, %v656_v16  ;;  %v667_v22 = vld [vmem:[#allocation3 + $0xc0] sm:$0xff]  ;;  %v669_v23 = vld [vmem:[#allocation3 + $0xc8] sm:$0xff]  ;;  %v139_v10 = vand.u32 127, %v138_v3 }
  0x19   :  { %v73_v24 = vadd.f32 %v72_v14, %v647_v11  ;;  %v97_v25 = vadd.f32 %v96_v15, %v651_v13  ;;  %v673_v26 = vld [vmem:[#allocation3 + $0x38] sm:$0xff]  ;;  %v675_v27 = vld [vmem:[#allocation3 + $0xd0] sm:$0xff]  ;;  %v101_v28 = vadd.f32 %v669_v23, %v667_v22  ;;  %v679_v29 = vld [vmem:[#allocation3 + $0x40] sm:$0xff] }
  0x1a   :  { %94 = vadd.xlane.f32.xlu1 %v93_v19  ;;  %v77_v30 = vadd.f32 %v76_v21, %v660_v18  ;;  %v682_v31 = vld [vmem:[#allocation3 + $0xd8] sm:$0xff]  ;;  %v684_v32 = vld [vmem:[#allocation3 + $0x48] sm:$0xff]  ;;  %v686_v33 = vld [vmem:[#allocation3 + $0x50] sm:$0xff]  ;;  %v144_v15 = vadd.s32 4294967288, %v139_v10  ;;  %v151_v21 = vadd.s32 4294967280, %v139_v10 }
  0x1b   :  { %74 = vadd.xlane.f32.xlu0 %v73_v24  ;;  %v98_v34 = vadd.f32 %v97_v25, %v663_v20  ;;  %v102_v35 = vadd.f32 %v101_v28, %v675_v27  ;;  %v81_v36 = vadd.f32 %v684_v32, %v679_v29  ;;  %v692_v37 = vld [vmem:[#allocation3 + $0xe0] sm:$0xff]  ;;  %v694_v38 = vld [vmem:[#allocation3 + $0xe8] sm:$0xff]  ;;  %v696_v39 = vld [vmem:[#allocation3 + $0xf0] sm:$0xff]  ;;  %v734_v24 = vshrl.u32 %v138_v3, 7 }
  0x1c   :  { %v78_v40 = vadd.f32 %v77_v30, %v673_v26  ;;  %v699_v41 = vld [vmem:[#allocation3 + $0x58] sm:$0xff]  ;;  %v106_v42 = vadd.f32 %v694_v38, %v692_v37  ;;  %v703_v43 = vld [vmem:[#allocation3 + $0x60] sm:$0xff]  ;;  %v705_v44 = vld [vmem:[#allocation3 + $0x68] sm:$0xff] }
  0x1d   :  { %v82_v45 = vadd.f32 %v81_v36, %v686_v33  ;;  %v708_v46 = vld [vmem:[#allocation3 + $0x70] sm:$0xff]  ;;  %v86_v47 = vadd.f32 %v705_v44, %v703_v43  ;;  %v103_v48 = vadd.f32 %v102_v35, %v682_v31  ;;  %v715_v51 = vld [vmem:[#allocation3 + $0xf8] sm:$0xff]  ;;  %v119_v56 = vld [vmem:[%s802_s1] sm:$0xff]  ;;  %v147_v28 = vsub.s32 %v144_v15, %v734_v24 }
  0x1e   :  { %99 = vadd.xlane.f32.xlu1 %v98_v34  ;;  %v107_v49 = vadd.f32 %v106_v42, %v696_v39  ;;  %v718_v53 = vld [vmem:[#allocation3 + $0x78] sm:$0xff]  ;;  %v120_v57 = vld [vmem:[%s802_s1 + $0x8] sm:$0xff]  ;;  %v121_v60 = vld [vmem:[%s802_s1 + $0x10] sm:$0xff]  ;;  %v158_v34 = vadd.s32 4294967272, %v139_v10  ;;  %v154_v36 = vsub.s32 %v151_v21, %v734_v24  ;;  %v142_v42 = vsub.s32 %v139_v10, %v734_v24 }
  0x1f   :  { %79 = vadd.xlane.f32.xlu0 %v78_v40  ;;  %v83_v50 = vadd.f32 %v82_v45, %v699_v41  ;;  %v87_v52 = vadd.f32 %v86_v47, %v708_v46  ;;  %v505_v58 = vpack.c.bf16 %v120_v57, %v119_v56  ;;  %v122_v61 = vld [vmem:[%s802_s1 + $0x18] sm:$0xff] }
  0x20   :  { %v108_v54 = vadd.f32 %v107_v49, %v715_v51  ;;  %v508_v62 = vpack.c.bf16 %v122_v61, %v121_v60 }
  0x21   :  { %v88_v55 = vadd.f32 %v87_v52, %v718_v53  ;;  %506 = vmatpush3.bf16.msra.mxu0 %v505_v58 }
  0x22   :  { %104 = vadd.xlane.f32.xlu1 %v103_v48  ;;  %507 = vmatprep.subr.bf16.mxu0 %v572_v59 }
  0x23   :  { %84 = vadd.xlane.f32.xlu0 %v83_v50 }
  0x25   :  { %509 = vmatpush3.bf16.msra.mxu0 %v508_v62 }
  0x26   :  { %109 = vadd.xlane.f32.xlu1 %v108_v54  ;;  %v161_v54 = vsub.s32 %v158_v34, %v734_v24  ;;  %v475_v34 = vld [vmem:[%s803_s2] ss:$0 sm:$0xff]  ;;  %s575_s2 = smov [#allocation6]  }
  0x27   :  { %89 = vadd.xlane.f32.xlu0 %v88_v55 }
  0xa7   :  { %v95_v8 = vpop.xlane.xlu1 %94 }
  0xa8   :  { %v75_v14 = vpop.xlane.xlu0 %74  ;;  %v115_v45 = vmul.f32 0.001953125, %v95_v8 }
  0xa9   :  { %v111_v49 = vmul.f32 0.001953125, %v75_v14 }
  0xaa   :  { %v168_v58 = vrot.slane %v115_v45, %v142_v42 }
  0xab   :  { %v100_v19 = vpop.xlane.xlu1 %99  ;;  %v143_v62 = vrot.slane %v111_v49, %v142_v42 }
  0xac   :  { %v80_v25 = vpop.xlane.xlu0 %79  ;;  %v116_v30 = vmul.f32 0.001953125, %v100_v19 }
  0xad   :  { %v112_v35 = vmul.f32 0.001953125, %v80_v25 }
  0xae   :  { %v172_v52 = vrot.slane %v116_v30, %v147_v28  ;;  %v264_v30 = vld [vmem:[%s805_s4] sm:$0x3] }
  0xaf   :  { %v105_v40 = vpop.xlane.xlu1 %104  ;;  %v148_v55 = vrot.slane %v112_v35, %v147_v28  ;;  %500 = vmatpush3.msk.msra.mxu1 %vm276_vm6, %v264_v30 }
  0xb0   :  { %v117_v47 = vmul.f32 0.001953125, %v105_v40  ;;  %v85_v48 = vpop.xlane.xlu0 %84  ;;  %v173_v3 = vsel %vm149_vm1, %v172_v52, %v168_v58 }
  0xb1   :  { %v113_v50 = vmul.f32 0.001953125, %v85_v48  ;;  %v150_v10 = vsel %vm149_vm1, %v148_v55, %v143_v62  ;;  %v477_v48 = vld [vmem:[%s806_s5] ss:$0 sm:$0xff] }
  0xb2   :  { %v177_v56 = vrot.slane %v117_v47, %v154_v36 }
  0xb3   :  { %v110_v57 = vpop.xlane.xlu1 %109  ;;  %v155_v59 = vrot.slane %v113_v50, %v154_v36  ;;  %v261_v36 = vstv %s804_s3  ;;  %s463_s3 = sshll.u32 %s575_s2, 4  ;;  %s464_s3 = int_to_ptr.vmem [resolvable:$true] %s463_s3 }
  0xb4   :  { %v118_v60 = vmul.f32 0.001953125, %v110_v57  ;;  %v90_v61 = vpop.xlane.xlu0 %89  ;;  %v178_v14 = vsel %vm156_vm2, %v177_v56, %v173_v3  ;;  %v358_v57 = vsub.s32 0, %v734_v24  ;;  %s543_s5 = scalar_lea.vmem %s464_s3, 4096  ;;  %p548_p9 = scmp.lt.s32.totalorder %s464_s3, %s464_s3 }
  0xb5   :  { %v114_v63 = vmul.f32 0.001953125, %v90_v61  ;;  %v157_v19 = vsel %vm156_vm2, %v155_v59, %v150_v10  ;;  %p544_p8 = scmp.ne.s32.totalorder %s464_s3, %s543_s5  ;;  %p549_p10 = scmp.lt.s32.totalorder %s543_s5, %s543_s5 }
  0xb6   :  { %v182_v8 = vrot.slane %v118_v60, %v161_v54  ;;  %v377_v60 = vsub.s32 1, %v734_v24 }
  0xb7   :  { %v162_v15 = vrot.slane %v114_v63, %v161_v54  ;;  %p550_p11 = por %p549_p10, %p548_p9 }
  0xb8   :  { %v183_v21 = vsel %vm163_vm3, %v182_v8, %v178_v14 }
  0xb9   :  { %v164_v25 = vsel %vm163_vm3, %v162_v15, %v157_v19  ;;  %p551_p12 = pnand %p550_p11, %p544_p8 }
  0xba   :  { %v185_v28 = vsel %vm184_vm4, %v183_v21, %v164_v25 }
  0xbb   :  { %497 = vmatmul.mubr.msk.f32.vlgmr.msra.gmra.mrb[0].mxu0 %vm186_vm5, %v185_v28 }
 0x18e   :  { %v255_v35 = vpop.f32.mrb[0].mxu0 }
 0x18f   :  { %v256_v40 = vadd.f32 %v475_v34, %v255_v35  ;;  %v498_v42 = vpop.f32.mrb[1].mxu0 }
 0x191   :  { %vm260_vm7 = vcmp.ge.f32.partialorder %v256_v40, 0.0  ;;  %v262_v45 = vmul.f32 %v261_v36, %v256_v40 }
 0x193   :  { %v263_v47 = vsel %vm260_vm7, %v256_v40, %v262_v45 }
 0x194   :  { %502 = vmatmul.mubr.msk.f32.vlgmr.msra.gmra.mrb[0].mxu1 %vm272_vm8, %v263_v47 }
 0x267   :  { %v346_v49 = vpop.f32.mrb[0].mxu1 }
 0x268   :  { %v347_v50 = vadd.f32 %v477_v48, %v346_v49  ;;  %v503_v52 = vpop.f32.mrb[1].mxu1 }
 0x26a   :  { %v480_v54 = vmul.f32 -1.442695, %v347_v50 }
 0x26c   :  { %517 = vpow2.f32 %v480_v54 }
 0x276   :  { %v518_v55 = vpop.eup %517 }
 0x277   :  { %v353_v56 = vadd.f32 1.0, %v518_v55 }
 0x279   :  { %519 = vrcp.f32 %v353_v56 }
 0x283   :  { %v520_v58 = vpop.eup %519 }
 0x284   :  { %v359_v59 = vrot.slane %v520_v58, %v358_v57  ;;  %v378_v61 = vrot.slane %v520_v58, %v377_v60 }
 0x286   :  { %365 = vbcast.lane.b32.xlu1 %v359_v59, 264  ;;  %361 = vbcast.lane.b32.xlu0 %v359_v59, 256 }
 0x28a   :  { %369 = vbcast.lane.b32.xlu1 %v359_v59, 272  ;;  %380 = vbcast.lane.b32.xlu0 %v378_v61, 256 }
 0x28e   :  { %373 = vbcast.lane.b32.xlu1 %v359_v59, 280  ;;  %388 = vbcast.lane.b32.xlu0 %v378_v61, 272 }
 0x292   :  { %384 = vbcast.lane.b32.xlu1 %v378_v61, 264 }
 0x296   :  { %392 = vbcast.lane.b32.xlu1 %v378_v61, 280 }
 0x2f8   :  { %v366_v62 = vpop.permute.xlu1 %365  ;;  %v362_v63 = vpop.permute.xlu0 %361 }
 0x2f9   :  { %v398_v3 = vmul.f32 %v366_v62, %v656_v16  ;;  %v399_v8 = vmul.f32 %v366_v62, %v658_v17  ;;  %v400_v10 = vmul.f32 %v366_v62, %v660_v18  ;;  %v401_v14 = vmul.f32 %v366_v62, %v673_v26 }
 0x2fa   :  { %v394_v24 = vmul.f32 %v362_v63, %v634_v4  ;;  %v395_v15 = vmul.f32 %v362_v63, %v636_v5  ;;  %v396_v19 = vmul.f32 %v362_v63, %v640_v7  ;;  %v397_v21 = vmul.f32 %v362_v63, %v647_v11 }
 0x2fb   :  { %430 = vst [vmem:[#allocation6 + $0x20] sm:$0xff] %v398_v3  ;;  %431 = vst [vmem:[#allocation6 + $0x28] sm:$0xff] %v399_v8 }
 0x2fc   :  { %432 = vst [vmem:[#allocation6 + $0x30] sm:$0xff] %v400_v10  ;;  %433 = vst [vmem:[#allocation6 + $0x38] sm:$0xff] %v401_v14  ;;  %v370_v16 = vpop.permute.xlu1 %369  ;;  %v381_v17 = vpop.permute.xlu0 %380 }
 0x2fd   :  { %426 = vst [vmem:[#allocation6] sm:$0xff] %v394_v24  ;;  %427 = vst [vmem:[#allocation6 + $0x8] sm:$0xff] %v395_v15  ;;  %v402_v18 = vmul.f32 %v370_v16, %v679_v29  ;;  %v403_v4 = vmul.f32 %v370_v16, %v684_v32  ;;  %v404_v5 = vmul.f32 %v370_v16, %v686_v33 }
 0x2fe   :  { %428 = vst [vmem:[#allocation6 + $0x10] sm:$0xff] %v396_v19  ;;  %429 = vst [vmem:[#allocation6 + $0x18] sm:$0xff] %v397_v21  ;;  %v405_v7 = vmul.f32 %v370_v16, %v699_v41  ;;  %v410_v11 = vmul.f32 %v381_v17, %v626_v0  ;;  %v411_v26 = vmul.f32 %v381_v17, %v628_v1 }
 0x2ff   :  { %v412_v25 = vmul.f32 %v381_v17, %v630_v2  ;;  %v413_v28 = vmul.f32 %v381_v17, %v638_v6  ;;  %434 = vst [vmem:[#allocation6 + $0x40] sm:$0xff] %v402_v18  ;;  %435 = vst [vmem:[#allocation6 + $0x48] sm:$0xff] %v403_v4 }
 0x300   :  { %436 = vst [vmem:[#allocation6 + $0x50] sm:$0xff] %v404_v5  ;;  %437 = vst [vmem:[#allocation6 + $0x58] sm:$0xff] %v405_v7  ;;  %v374_v29 = vpop.permute.xlu1 %373  ;;  %v389_v32 = vpop.permute.xlu0 %388 }
 0x301   :  { %442 = vst [vmem:[#allocation6 + $0x80] sm:$0xff] %v410_v11  ;;  %443 = vst [vmem:[#allocation6 + $0x88] sm:$0xff] %v411_v26  ;;  %v406_v33 = vmul.f32 %v374_v29, %v703_v43  ;;  %v407_v0 = vmul.f32 %v374_v29, %v705_v44  ;;  %v408_v1 = vmul.f32 %v374_v29, %v708_v46 }
 0x302   :  { %444 = vst [vmem:[#allocation6 + $0x90] sm:$0xff] %v412_v25  ;;  %445 = vst [vmem:[#allocation6 + $0x98] sm:$0xff] %v413_v28  ;;  %v409_v2 = vmul.f32 %v374_v29, %v718_v53  ;;  %v418_v6 = vmul.f32 %v389_v32, %v667_v22  ;;  %v419_v41 = vmul.f32 %v389_v32, %v669_v23 }
 0x303   :  { %v420_v30 = vmul.f32 %v389_v32, %v675_v27  ;;  %v421_v34 = vmul.f32 %v389_v32, %v682_v31  ;;  %438 = vst [vmem:[#allocation6 + $0x60] sm:$0xff] %v406_v33  ;;  %439 = vst [vmem:[#allocation6 + $0x68] sm:$0xff] %v407_v0 }
 0x304   :  { %440 = vst [vmem:[#allocation6 + $0x70] sm:$0xff] %v408_v1  ;;  %441 = vst [vmem:[#allocation6 + $0x78] sm:$0xff] %v409_v2  ;;  %v385_v43 = vpop.permute.xlu1 %384 }
 0x305   :  { %450 = vst [vmem:[#allocation6 + $0xc0] sm:$0xff] %v418_v6  ;;  %451 = vst [vmem:[#allocation6 + $0xc8] sm:$0xff] %v419_v41  ;;  %v414_v44 = vmul.f32 %v385_v43, %v644_v9  ;;  %v415_v46 = vmul.f32 %v385_v43, %v649_v12  ;;  %v416_v22 = vmul.f32 %v385_v43, %v651_v13 }
 0x306   :  { %452 = vst [vmem:[#allocation6 + $0xd0] sm:$0xff] %v420_v30  ;;  %453 = vst [vmem:[#allocation6 + $0xd8] sm:$0xff] %v421_v34  ;;  %v417_v23 = vmul.f32 %v385_v43, %v663_v20 }
 0x307   :  { %446 = vst [vmem:[#allocation6 + $0xa0] sm:$0xff] %v414_v44  ;;  %447 = vst [vmem:[#allocation6 + $0xa8] sm:$0xff] %v415_v46 }
 0x308   :  { %448 = vst [vmem:[#allocation6 + $0xb0] sm:$0xff] %v416_v22  ;;  %449 = vst [vmem:[#allocation6 + $0xb8] sm:$0xff] %v417_v23  ;;  %v393_v27 = vpop.permute.xlu1 %392 }
 0x309   :  { %v422_v31 = vmul.f32 %v393_v27, %v692_v37  ;;  %v423_v53 = vmul.f32 %v393_v27, %v694_v38  ;;  %v424_v35 = vmul.f32 %v393_v27, %v696_v39  ;;  %v425_v9 = vmul.f32 %v393_v27, %v715_v51 }
 0x30b   :  { %454 = vst [vmem:[#allocation6 + $0xe0] sm:$0xff] %v422_v31  ;;  %455 = vst [vmem:[#allocation6 + $0xe8] sm:$0xff] %v423_v53 }
 0x30c   :  { %456 = vst [vmem:[#allocation6 + $0xf0] sm:$0xff] %v424_v35  ;;  %457 = vst [vmem:[#allocation6 + $0xf8] sm:$0xff] %v425_v9 }
 0x30d   :  { %554 = shalt.err (!%p551_p12)
}
 0x30e   :  { %s555_s26 = scalar_lea.hbm %s807_s6, 4096 }
 0x30f   :  { %p556_p13 = scmp.ne.s32.totalorder %s807_s6, %s555_s26  ;;  %p559_p0 = scmp.lt.u32.totalorder %s555_s26, %s807_s6 }
 0x311   :  { %p561_p1 = pnand %p559_p0, %p556_p13 }
 0x313   :  { %564 = shalt.err (!%p561_p1)
}
 0x314   :  { %469 = dma.vmem_to_hbm [thread:$0]  %s464_s3, 4096, %s807_s6, [#allocation5], %s570_s7, %s570_s7, %s571_s8  }
 0x315   :  { %567 = dma.done.wait [#allocation5], 4096  }
 0x316   :  { %568 = vsyncadd [#allocation5], 4294963200 }
 0x317   :  { %473 = vsyncpa [#allocation4], 1 }
 0x318   :  { %474 = vsyncpa [#allocation5], 1 }

</bundles_post_ra>
